<compile_context>
chip_gen: v7x
topology: tpu7x:2x2x1
jax: 0.10.0
libtpu: 0.0.40
codegen_flags: <defaults>
</compile_context>

<pallas_src>
import functools

import jax
import jax.numpy as jnp
from jax.experimental import pallas as pl
from jax.experimental.pallas import tpu as pltpu


def _device_params():
    """Return (per-input block bytes, tensorcores to shard over)."""
    kind = ""
    try:
        kind = jax.devices()[0].device_kind.lower()
    except Exception:
        pass
    block_bytes = 2 * 1024 * 1024   # safe default (fits v5e's 16 MiB scoped VMEM)
    num_cores = 1
    if "v5 lite" in kind or "v5e" in kind or "v5lite" in kind:
        block_bytes, num_cores = 2 * 1024 * 1024, 1
    elif "v6" in kind:
        block_bytes, num_cores = 4 * 1024 * 1024, 1
    elif "7" in kind:                                     # v7x: 2 TCs, 3.2 TB/s
        block_bytes, num_cores = 4 * 1024 * 1024, 2
    elif "v4" in kind or "v5p" in kind or "v5" in kind:   # megacore chips
        block_bytes, num_cores = 2 * 1024 * 1024, 2
    return block_bytes, num_cores


def _mae_kernel(pred_ref, label_ref, out_ref, acc_ref, *,
                tile_rows, acc_rows, width, valid_rows,
                steps_per_core, needs_any_mask):
    c = pl.program_id(0)                  # core / row-range index ('parallel')
    i = pl.program_id(1)                  # reduction step within the range
    gb = c * steps_per_core + i           # logical (unclamped) block index

    @pl.when(i == 0)
    def _():
        acc_ref[...] = jnp.zeros_like(acc_ref)

    n_sub = tile_rows // acc_rows

    def accumulate(masked):
        for s in range(n_sub):
            rs = s * acc_rows
            p = pred_ref[pl.ds(rs, acc_rows), :].astype(jnp.float32)
            l = label_ref[pl.ds(rs, acc_rows), :].astype(jnp.float32)
            d = jnp.abs(p - l)
            if masked:
                row_ids = (gb * tile_rows + rs
                           + jax.lax.broadcasted_iota(
                               jnp.int32, (acc_rows, width), 0))
                d = jnp.where(row_ids < valid_rows, d, jnp.float32(0.0))
            acc_ref[...] = acc_ref[...] + d

    if needs_any_mask:
        # Only blocks straddling (or past) the end of the data pay for the
        # iota/compare/select; all other steps do the plain accumulate.
        partial_blk = (gb + 1) * tile_rows > valid_rows

        @pl.when(jnp.logical_not(partial_blk))
        def _():
            accumulate(False)

        @pl.when(partial_blk)
        def _():
            accumulate(True)
    else:
        accumulate(False)

    @pl.when(i == pl.num_programs(1) - 1)
    def _():
        # One cross-lane reduce per core; broadcast the partial sum into this
        # core's (8, 128) output block (lane-dense unmasked store).
        out_ref[...] = jnp.broadcast_to(jnp.sum(acc_ref[...]), (8, 128))


def mae_loss(prediction, label):
    assert prediction.shape == label.shape, "shape mismatch"
    total = int(prediction.size)

    pred_flat = prediction.reshape(-1)
    label_flat = label.reshape(-1)

    # Widest lane-dense width that divides the element count -> free reshape.
    width = None
    for w in (1024, 512, 256, 128):
        if total % w == 0:
            width = w
            break
    pad = 0
    if width is None:
        # Rare fallback: pad the tail to a 128 multiple (zeros contribute 0).
        width = 128
        pad = width - (total % width)
        pred_flat = jnp.pad(pred_flat, (0, pad))
        label_flat = jnp.pad(label_flat, (0, pad))

    rows = (total + pad) // width
    pred2d = pred_flat.reshape(rows, width)
    label2d = label_flat.reshape(rows, width)

    itemsize = max(jnp.dtype(prediction.dtype).itemsize,
                   jnp.dtype(label.dtype).itemsize)

    block_bytes, num_cores = _device_params()

    max_rows_per_block = max(block_bytes // (width * itemsize), 32)
    if rows <= max_rows_per_block:
        tile_rows = rows                    # single full-array block (legal)
    else:
        tile_rows = (max_rows_per_block // 32) * 32

    total_blocks = (rows + tile_rows - 1) // tile_rows
    num_cores = max(1, min(num_cores, total_blocks))
    steps_per_core = (total_blocks + num_cores - 1) // num_cores
    needs_any_mask = (num_cores * steps_per_core * tile_rows) != rows

    # Fixed-size accumulator decoupled from the block: add the block in n_sub
    # sub-slices so the f32 accumulator stays ~block/8 regardless of dtype.
    n_sub = 1
    for cand in (8, 4, 2):
        if tile_rows % cand == 0 and (tile_rows // cand) % 8 == 0:
            n_sub = cand
            break
    acc_rows = tile_rows // n_sub

    kernel = functools.partial(
        _mae_kernel,
        tile_rows=tile_rows,
        acc_rows=acc_rows,
        width=width,
        valid_rows=rows,
        steps_per_core=steps_per_core,
        needs_any_mask=needs_any_mask,
    )

    def in_map(c, i):
        # Clamp so rounding the block count up to num_cores*steps_per_core
        # never issues an out-of-bounds DMA; over-read blocks are fully
        # masked out inside the kernel.
        return (jnp.minimum(c * steps_per_core + i, total_blocks - 1), 0)

    # VMEM budget: 2 inputs x 2 pipeline buffers x block + f32 acc + out.
    vmem_need = (2 * 2 * tile_rows * width * itemsize
                 + acc_rows * width * 4
                 + 2 * 8 * 128 * 4)
    vmem_limit = int(min(max(vmem_need + (4 << 20), 16 << 20), 64 << 20))

    bytes_accessed = (total * (jnp.dtype(prediction.dtype).itemsize
                               + jnp.dtype(label.dtype).itemsize)
                      + num_cores * 8 * 128 * 4)

    partials = pl.pallas_call(
        kernel,
        out_shape=jax.ShapeDtypeStruct((num_cores * 8, 128), jnp.float32),
        grid_spec=pltpu.PrefetchScalarGridSpec(
            num_scalar_prefetch=0,
            grid=(num_cores, steps_per_core),
            in_specs=[
                pl.BlockSpec((tile_rows, width), in_map),
                pl.BlockSpec((tile_rows, width), in_map),
            ],
            out_specs=pl.BlockSpec((8, 128), lambda c, i: (c, 0)),
            scratch_shapes=[pltpu.VMEM((acc_rows, width), jnp.float32)],
        ),
        compiler_params=pltpu.CompilerParams(
            dimension_semantics=("parallel", "arbitrary"),
            vmem_limit_bytes=vmem_limit,
        ),
        cost_estimate=pl.CostEstimate(
            flops=3 * total,
            transcendentals=0,
            bytes_accessed=bytes_accessed,
        ),
    )(pred2d, label2d)

    # Each core's partial sum is broadcast over its (8, 128) block; combine
    # the per-core partials and divide by the unpadded element count.
    per_core = partials[0::8, 0]
    return jnp.sum(per_core) / jnp.float32(total)


if __name__ == "__main__":
    key = jax.random.PRNGKey(0)
    k1, k2 = jax.random.split(key)
    # Small NCHW-shaped inputs consistent with the module's forward.
    prediction = jax.random.normal(k1, (2, 4, 16, 16), dtype=jnp.float32)
    label = jax.random.normal(k2, (2, 4, 16, 16), dtype=jnp.float32)

    mae = mae_loss(prediction, label)
    mae = jax.block_until_ready(mae)

    # Pure-JAX reference check.
    ref = jnp.mean(jnp.abs(prediction - label))
    assert jnp.allclose(mae, ref, rtol=1e-5, atol=1e-6), (mae, ref)

    print("KERNEL_OK")
</pallas_src>

<mosaic_0001>
module attributes {stable_mosaic.version = 11 : i64} {
  func.func @_mae_kernel(%arg0: i32, %arg1: i32, %arg2: memref<2x1024xf32, #tpu.memory_space<vmem>>, %arg3: memref<2x1024xf32, #tpu.memory_space<vmem>>, %arg4: memref<8x128xf32, #tpu.memory_space<vmem>>, %arg5: memref<2x1024xf32, #tpu.memory_space<vmem>>) attributes {dimension_semantics = [#tpu.dimension_semantics<parallel>, #tpu.dimension_semantics<arbitrary>], iteration_bounds = array<i64: 1, 1>, scalar_prefetch = 0 : i64, scratch_operands = 1 : i64, tpu.core_type = #tpu.core_type<tc>, window_params = [{transform_indices = @transform_0, window_bounds = array<i64: 2, 1024>}, {transform_indices = @transform_1, window_bounds = array<i64: 2, 1024>}, {transform_indices = @transform_2, window_bounds = array<i64: 8, 128>}]} {
    %c0_i32 = arith.constant 0 : i32
    %0 = arith.cmpi eq, %arg1, %c0_i32 : i32
    %1 = arith.extui %0 : i1 to i32
    %c0_i32_0 = arith.constant 0 : i32
    %2 = arith.cmpi ne, %1, %c0_i32_0 : i32
    scf.if %2 {
      %cst = arith.constant 0.000000e+00 : f32
      %13 = vector.broadcast %cst : f32 to vector<2x1024xf32>
      %c0_10 = arith.constant 0 : index
      %c0_11 = arith.constant 0 : index
      %14 = vector.load %arg5[%c0_10, %c0_11] : memref<2x1024xf32, #tpu.memory_space<vmem>>, vector<2x1024xf32>
      tpu.vector_store %arg5[%c0_10, %c0_11], %13 {strides = array<i32>} : memref<2x1024xf32, #tpu.memory_space<vmem>>, vector<2x1024xf32>,
    } else {
    }
    %c0 = arith.constant 0 : index
    %c0_1 = arith.constant 0 : index
    %3 = vector.load %arg2[%c0, %c0_1] : memref<2x1024xf32, #tpu.memory_space<vmem>>, vector<2x1024xf32>
    %c0_2 = arith.constant 0 : index
    %c0_3 = arith.constant 0 : index
    %4 = vector.load %arg3[%c0_2, %c0_3] : memref<2x1024xf32, #tpu.memory_space<vmem>>, vector<2x1024xf32>
    %5 = arith.subf %3, %4 : vector<2x1024xf32>
    %6 = math.absf %5 : vector<2x1024xf32>
    %c0_4 = arith.constant 0 : index
    %c0_5 = arith.constant 0 : index
    %7 = vector.load %arg5[%c0_4, %c0_5] : memref<2x1024xf32, #tpu.memory_space<vmem>>, vector<2x1024xf32>
    %8 = arith.addf %7, %6 : vector<2x1024xf32>
    %c0_6 = arith.constant 0 : index
    %c0_7 = arith.constant 0 : index
    %9 = vector.load %arg5[%c0_6, %c0_7] : memref<2x1024xf32, #tpu.memory_space<vmem>>, vector<2x1024xf32>
    tpu.vector_store %arg5[%c0_6, %c0_7], %8 {strides = array<i32>} : memref<2x1024xf32, #tpu.memory_space<vmem>>, vector<2x1024xf32>,
    %c0_i32_8 = arith.constant 0 : i32
    %10 = arith.cmpi eq, %arg1, %c0_i32_8 : i32
    %11 = arith.extui %10 : i1 to i32
    %c0_i32_9 = arith.constant 0 : i32
    %12 = arith.cmpi ne, %11, %c0_i32_9 : i32
    scf.if %12 {
      %c0_10 = arith.constant 0 : index
      %c0_11 = arith.constant 0 : index
      %13 = vector.load %arg5[%c0_10, %c0_11] : memref<2x1024xf32, #tpu.memory_space<vmem>>, vector<2x1024xf32>
      %14 = vector.shape_cast %13 : vector<2x1024xf32> to vector<1x2x1024xf32>
      %cst = arith.constant dense<0.000000e+00> : vector<1xf32>
      %15 = vector.multi_reduction <add>, %14, %cst [1, 2] : vector<1x2x1024xf32> to vector<1xf32>
      %16 = vector.shape_cast %15 : vector<1xf32> to vector<1x1x1xf32>
      %17 = vector.extract %16[0, 0, 0] : f32 from vector<1x1x1xf32>
      %18 = vector.broadcast %17 : f32 to vector<8x128xf32>
      %c0_12 = arith.constant 0 : index
      %c0_13 = arith.constant 0 : index
      %19 = vector.load %arg4[%c0_12, %c0_13] : memref<8x128xf32, #tpu.memory_space<vmem>>, vector<8x128xf32>
      tpu.vector_store %arg4[%c0_12, %c0_13], %18 {strides = array<i32>} : memref<8x128xf32, #tpu.memory_space<vmem>>, vector<8x128xf32>,
    } else {
    }
    return
  }
  func.func @transform_0(%arg0: i32, %arg1: i32) -> (i32, i32) {
    %c1_i32 = arith.constant 1 : i32
    %0 = arith.muli %arg0, %c1_i32 : i32
    %1 = arith.addi %0, %arg1 : i32
    %c0_i32 = arith.constant 0 : i32
    %2 = arith.minsi %1, %c0_i32 : i32
    %c0_i32_0 = arith.constant 0 : i32
    %c0_i32_1 = arith.constant 0 : i32
    return %2, %c0_i32_0 : i32, i32
  }
  func.func @transform_1(%arg0: i32, %arg1: i32) -> (i32, i32) {
    %c1_i32 = arith.constant 1 : i32
    %0 = arith.muli %arg0, %c1_i32 : i32
    %1 = arith.addi %0, %arg1 : i32
    %c0_i32 = arith.constant 0 : i32
    %2 = arith.minsi %1, %c0_i32 : i32
    %c0_i32_0 = arith.constant 0 : i32
    %c0_i32_1 = arith.constant 0 : i32
    return %2, %c0_i32_0 : i32, i32
  }
  func.func @transform_2(%arg0: i32, %arg1: i32) -> (i32, i32) {
    %c0_i32 = arith.constant 0 : i32
    %c0_i32_0 = arith.constant 0 : i32
    return %arg0, %c0_i32 : i32, i32
  }
}

</mosaic_0001>

<bundles_post_ra>
// kernel: tpu_custom_call.1
= control target key start
LH: loop header
LB: loop body
LE: loop exit
PB: predicated region body
PF: predicated region fallthrough
CT: control target
= control target key end

     0   :  { %7 = vsyncpa [#allocation4], 0  ;;  %s311_s0 = inlined_call_operand.hbm [shape: f32[2,1024], index: 0, kind: input, shape index: {}]   ;;  %s312_s1 = inlined_call_operand.hbm [shape: f32[2,1024], index: 1, kind: input, shape index: {}]   ;;  %s313_s2 = inlined_call_operand.hbm [shape: f32[8,128], index: 2, kind: output, shape index: {}]  }
   0x1   :  { %8 = vsyncpa [#allocation7], 0 }
   0x2   :  { %9 = vsyncpa [#allocation5], 0  ;;  %s248_s9 = smov [#allocation3]   ;;  %s249_s11 = smov [#allocation6]  }
   0x3   :  { %s22_s10 = sshll.u32 %s248_s9, 4  ;;  %s38_s12 = sshll.u32 %s249_s11, 4  ;;  %s23_s10 = int_to_ptr.vmem [resolvable:$true] %s22_s10  ;;  %s39_s12 = int_to_ptr.vmem [resolvable:$true] %s38_s12 }
   0x4   :  { %s176_s15 = scalar_lea.hbm %s311_s0, 256 }
   0x5   :  { %p177_p0 = scmp.ne.s32.totalorder %s311_s0, %s176_s15  ;;  %p180_p1 = scmp.lt.u32.totalorder %s176_s15, %s311_s0 }
   0x7   :  { %p182_p2 = pnand %p180_p1, %p177_p0 }
   0x9   :  { %185 = shalt.err (!%p182_p2)
}
   0xa   :  { %s186_s20 = scalar_lea.vmem %s23_s10, 256  ;;  %p191_p4 = scmp.lt.s32.totalorder %s23_s10, %s23_s10 }
   0xb   :  { %p187_p3 = scmp.ne.s32.totalorder %s23_s10, %s186_s20  ;;  %p192_p5 = scmp.lt.s32.totalorder %s186_s20, %s186_s20 }
   0xd   :  { %p193_p6 = por %p192_p5, %p191_p4 }
   0xf   :  { %p194_p7 = pnand %p193_p6, %p187_p3 }
  0x11   :  { %197 = shalt.err (!%p194_p7)
}
  0x12   :  { %25 = dma.hbm_to_vmem [thread:$0]  %s311_s0, 256, %s23_s10, [#allocation4]  }
  0x13   :  { %s198_s25 = scalar_lea.hbm %s312_s1, 256 }
  0x14   :  { %p199_p8 = scmp.ne.s32.totalorder %s312_s1, %s198_s25  ;;  %p202_p9 = scmp.lt.u32.totalorder %s198_s25, %s312_s1 }
  0x16   :  { %p204_p10 = pnand %p202_p9, %p199_p8 }
  0x18   :  { %207 = shalt.err (!%p204_p10)
}
  0x19   :  { %s208_s30 = scalar_lea.vmem %s39_s12, 256  ;;  %p213_p12 = scmp.lt.s32.totalorder %s39_s12, %s39_s12 }
  0x1a   :  { %p209_p11 = scmp.ne.s32.totalorder %s39_s12, %s208_s30  ;;  %p214_p13 = scmp.lt.s32.totalorder %s208_s30, %s208_s30 }
  0x1c   :  { %p215_p0 = por %p214_p13, %p213_p12 }
  0x1e   :  { %p216_p1 = pnand %p215_p0, %p209_p11 }
  0x20   :  { %219 = shalt.err (!%p216_p1)
}
  0x21   :  { %41 = dma.hbm_to_vmem [thread:$0]  %s312_s1, 256, %s39_s12, [#allocation7]  }
  0x22   :  { %242 = dma.done.wait [#allocation4], 256  }
  0x23   :  { %243 = vsyncadd [#allocation4], 4294967040 }
  0x24   :  { %244 = dma.done.wait [#allocation7], 256  }
  0x25   :  { %245 = vsyncadd [#allocation7], 4294967040  ;;  %v85_v0 = vlaneseq  ;;  %v250_v1 = vmov 1983009808   ;;  %v60_v5 = vld [vmem:[#allocation3] sm:$0xff]  ;;  %v61_v6 = vld [vmem:[#allocation3 + $0x8] sm:$0xff] }
  0x26   :  { %v83_v2 = vunpack.c.l.s4 %v250_v1  ;;  %v62_v7 = vld [vmem:[#allocation6] sm:$0xff]  ;;  %v63_v8 = vld [vmem:[#allocation6 + $0x8] sm:$0xff]  ;;  %vm123_vm0 = vcmask 1041408   ;;  %s251_s1 = smov [#allocation8]  }
  0x27   :  { %v86_v4 = vshrl.u32 %v85_v0, 7  ;;  %v64_v9 = vsub.f32 %v60_v5, %v62_v7  ;;  %v65_v11 = vsub.f32 %v61_v6, %v63_v8  ;;  %s156_s4 = sshll.u32 %s251_s1, 4  ;;  %s157_s4 = int_to_ptr.vmem [resolvable:$true] %s156_s4 }
  0x28   :  { %v84_v3 = vunpack.c.0.s8 %v83_v2  ;;  %s220_s6 = scalar_lea.vmem %s157_s4, 128  ;;  %p225_p3 = scmp.lt.s32.totalorder %s157_s4, %s157_s4 }
  0x29   :  { %v66_v12 = vand.u32 2147483647, %v64_v9  ;;  %v67_v13 = vand.u32 2147483647, %v65_v11  ;;  %p221_p2 = scmp.ne.s32.totalorder %s157_s4, %s220_s6  ;;  %p226_p4 = scmp.lt.s32.totalorder %s220_s6, %s220_s6 }
  0x2a   :  { %v87_v10 = vsub.s32 %v84_v3, %v86_v4 }
  0x2b   :  { %v81_v14 = vcombine.high %v66_v12, %v66_v12  ;;  %v98_v16 = vcombine.high %v67_v13, %v67_v13  ;;  %p227_p5 = por %p226_p4, %p225_p3 }
  0x2c   :  { %v88_v15 = vrot.slane %v66_v12, %v87_v10  ;;  %v105_v19 = vrot.slane %v67_v13, %v87_v10 }
  0x2d   :  { %v95_v17 = vrot.slane %v81_v14, %v87_v10  ;;  %v112_v25 = vrot.slane %v98_v16, %v87_v10  ;;  %p228_p6 = pnand %p227_p5, %p221_p2 }
  0x2e   :  { %v96_v18 = vcombine.high %v88_v15, %v88_v15  ;;  %v124_v20 = vsel %vm123_vm0, %v88_v15, 0.0  ;;  %v113_v26 = vcombine.high %v105_v19, %v105_v19  ;;  %v131_v29 = vsel %vm123_vm0, %v105_v19, 0.0 }
  0x2f   :  { %v97_v21 = vcombine.high %v95_v17, %v95_v17  ;;  %v127_v23 = vsel %vm123_vm0, %v95_v17, 0.0  ;;  %v114_v31 = vcombine.high %v112_v25, %v112_v25  ;;  %v135_v34 = vsel %vm123_vm0, %v112_v25, 0.0 }
  0x30   :  { %v125_v22 = vsel %vm123_vm0, %v96_v18, 0.0  ;;  %v133_v32 = vsel %vm123_vm0, %v113_v26, 0.0 }
  0x31   :  { %v126_v24 = vadd.f32 %v125_v22, %v124_v20  ;;  %v129_v27 = vsel %vm123_vm0, %v97_v21, 0.0  ;;  %v137_v36 = vsel %vm123_vm0, %v114_v31, 0.0 }
  0x33   :  { %v128_v28 = vadd.f32 %v127_v23, %v126_v24 }
  0x35   :  { %v130_v30 = vadd.f32 %v129_v27, %v128_v28 }
  0x37   :  { %v132_v33 = vadd.f32 %v131_v29, %v130_v30 }
  0x39   :  { %v134_v35 = vadd.f32 %v133_v32, %v132_v33 }
  0x3b   :  { %v136_v37 = vadd.f32 %v135_v34, %v134_v35 }
  0x3d   :  { %v138_v38 = vadd.f32 %v137_v36, %v136_v37 }
  0x3f   :  { %139 = vadd.xlane.f32.xlu0 %v138_v38 }
  0xcc   :  { %v140_v39 = vpop.xlane.xlu0 %139 }
  0xcd   :  { %v141_v40 = vrot.slane %v140_v39, 4 }
  0xcf   :  { %v142_v41 = vadd.f32 %v141_v40, %v140_v39 }
  0xd1   :  { %v143_v42 = vrot.slane %v142_v41, 2 }
  0xd3   :  { %v144_v43 = vadd.f32 %v143_v42, %v142_v41 }
  0xd5   :  { %v145_v44 = vrot.slane %v144_v43, 1 }
  0xd7   :  { %v146_v45 = vadd.f32 %v145_v44, %v144_v43 }
  0xd9   :  { %170 = vpush %v146_v45 }
 0x10a   :  { %s171_s5 = spop %170 }
 0x10b   :  { %v148_v46 = vstv %s171_s5 }
 0x10c   :  { %149 = vst [vmem:[#allocation8] sm:$0xff] %v148_v46 }
 0x10d   :  { %231 = shalt.err (!%p228_p6)
}
 0x10e   :  { %s232_s9 = scalar_lea.hbm %s313_s2, 128 }
 0x10f   :  { %p233_p7 = scmp.ne.s32.totalorder %s313_s2, %s232_s9  ;;  %p236_p8 = scmp.lt.u32.totalorder %s232_s9, %s313_s2 }
 0x111   :  { %p238_p9 = pnand %p236_p8, %p233_p7 }
 0x113   :  { %241 = shalt.err (!%p238_p9)
}
 0x114   :  { %159 = dma.vmem_to_hbm [thread:$0]  %s157_s4, 128, %s313_s2, [#allocation5]  }
 0x115   :  { %246 = dma.done.wait [#allocation5], 128  }
 0x116   :  { %247 = vsyncadd [#allocation5], 4294967168 }
 0x117   :  { %163 = vsyncpa [#allocation4], 1 }
 0x118   :  { %164 = vsyncpa [#allocation7], 1 }
 0x119   :  { %165 = vsyncpa [#allocation5], 1 }

</bundles_post_ra>
